<compile_context>
chip_gen: v7x
topology: tpu7x:2x2x1
jax: 0.10.0
libtpu: 0.0.40
codegen_flags: <defaults>
</compile_context>

<pallas_src>
import functools

import jax
import jax.numpy as jnp
from jax.experimental import pallas as pl
from jax.experimental.pallas import tpu as pltpu

EPS = 1e-5
LANE = 128
SUBLANE = 8
BATCH_ALIGN = 16  # bf16 sublane packing; also satisfies f32's 8


def _round_up(x, m):
    return (x + m - 1) // m * m


# ----------------------------------------------------------------------------
# Kernel
# ----------------------------------------------------------------------------
def generator_kernel(x_ref, w0, w1, w2, w3, w4, vec_ref, out_ref, *,
                     n_valid, bp, fpad):
    """Fused MLP forward.

    x_ref : [Bp, fpad[0]] bf16 (zero-padded batch rows / feature cols)
    w*    : [fpad[i], fpad[i+1]] bf16 (zero-padded)
    vec_ref: [16, vmax] f32 packed per-feature vectors
             rows 2i, 2i+1 = gamma_i, beta_i (i=0..3); row 8 = final bias
    out_ref: [Bp, fpad[5]] f32 (lane-dense, padded)
    """
    inv_n = 1.0 / float(n_valid)

    # Valid-row mask [1, Bp], built in-kernel (n_valid is a trace-time constant).
    # BN stats become masked MXU dots instead of ragged XLU axis-0 reductions.
    row_ids = jax.lax.broadcasted_iota(jnp.int32, (1, bp), 1)
    mask = (row_ids < n_valid).astype(jnp.float32)

    h = x_ref[...]  # bf16
    for i, w_ref in enumerate((w0, w1, w2, w3)):
        width = fpad[i + 1]
        g = vec_ref[2 * i + 0:2 * i + 1, :width]      # [1, width] f32
        beta = vec_ref[2 * i + 1:2 * i + 2, :width]

        # Linear on the MXU (bias omitted: train-mode BN cancels it exactly).
        y = jnp.dot(h, w_ref[...], preferred_element_type=jnp.float32)

        # BatchNorm1d (training mode) stats over the REAL rows only, f32,
        # one-pass variance via masked MXU reductions; clamp against f32
        # cancellation before rsqrt.
        mean = jnp.dot(mask, y, preferred_element_type=jnp.float32) * inv_n
        meansq = jnp.dot(mask, y * y, preferred_element_type=jnp.float32) * inv_n
        var = jnp.maximum(meansq - mean * mean, 0.0)

        # Fused BN affine: two VPU ops per element, rsqrt on the EUP.
        scale = g * jax.lax.rsqrt(var + EPS)
        shift = beta - mean * scale
        h = jnp.maximum(y * scale + shift, 0.0).astype(jnp.bfloat16)

    # Final Linear + Sigmoid (sigmoid via tanh on the EUP; exact identity).
    b_out = vec_ref[8:9, :fpad[5]]
    z = jnp.dot(h, w4[...], preferred_element_type=jnp.float32) + b_out
    out_ref[...] = 0.5 * (jnp.tanh(0.5 * z) + 1.0)


# ----------------------------------------------------------------------------
# Parameter packing (pad + cast once, outside the kernel)
# ----------------------------------------------------------------------------
def _pack_params(params, feat, fpad):
    """Pad weights to (fpad_in, fpad_out) bf16; pack gamma/beta per BN layer and
    the final bias into one [16, vmax] f32 array (biases of BN layers dropped)."""
    vmax = max(fpad[1:])
    weights = []
    vec_rows = []
    idx = 0
    for layer in range(5):
        fin, fout = feat[layer], feat[layer + 1]
        fin_p, fout_p = fpad[layer], fpad[layer + 1]
        if layer < 4:
            w, _b, g, beta = params[idx:idx + 4]   # Linear bias cancelled by BN
            idx += 4
            layer_vecs = [g, beta]
        else:
            w, b = params[idx:idx + 2]
            idx += 2
            layer_vecs = [b]
        wp = (jnp.zeros((fin_p, fout_p), jnp.float32)
              .at[:fin, :fout].set(w)
              .astype(jnp.bfloat16))
        weights.append(wp)
        for v in layer_vecs:
            vec_rows.append(jnp.zeros((vmax,), jnp.float32).at[:fout].set(v.reshape(-1)))

    n_rows = _round_up(len(vec_rows), SUBLANE) * 2        # 9 -> 16 rows
    n_rows = _round_up(len(vec_rows), SUBLANE)
    n_rows = max(n_rows, 16) if len(vec_rows) > 8 else n_rows
    vec_pack = (jnp.zeros((_round_up(len(vec_rows), SUBLANE), vmax), jnp.float32)
                .at[:len(vec_rows)].set(jnp.stack(vec_rows)))
    return weights, vec_pack


# ----------------------------------------------------------------------------
# Wrapper
# ----------------------------------------------------------------------------
def generator_forward(x, params):
    """x: [B, in_features] f32; params: flat list of 18 arrays (see init_params)."""
    B, in_features = x.shape
    feat = [params[0].shape[0], params[0].shape[1], params[4].shape[1],
            params[8].shape[1], params[12].shape[1], params[16].shape[1]]
    assert feat[0] == in_features
    fpad = [_round_up(f, LANE) for f in feat]

    # Pad batch to a sublane-pack multiple only (16); padded rows are excluded
    # from the BN statistics inside the kernel via the valid-row mask.
    Bp = _round_up(B, BATCH_ALIGN)

    weights_bf16, vec_pack = _pack_params(params, feat, fpad)

    xp = (jnp.zeros((Bp, fpad[0]), jnp.bfloat16)
          .at[:B, :in_features].set(x.astype(jnp.bfloat16)))

    # Cost estimate: main matmuls + masked stat dots (rsqrt + tanh transcendentals).
    flops = int(2 * Bp * sum(fpad[i] * fpad[i + 1] for i in range(5))
                + 4 * Bp * sum(fpad[1:5]))
    transcendentals = int(sum(fpad[1:5]) + Bp * fpad[5])
    bytes_accessed = int(xp.size * 2
                         + sum(w.size for w in weights_bf16) * 2
                         + vec_pack.size * 4
                         + Bp * fpad[5] * 4)

    # Scoped-VMEM limit: cover the whole-model-in-VMEM footprint (v5e default is
    # only 16 MiB) but stay <= 32 MiB so the setting is valid on every generation.
    vmem_need = bytes_accessed + 4 * Bp * max(fpad)   # rough f32 intermediate slab
    vmem_limit = int(min(32 * 1024 * 1024, max(4 * vmem_need, 4 * 1024 * 1024)))

    kern = functools.partial(generator_kernel, n_valid=B, bp=Bp, fpad=tuple(fpad))
    out_pad = pl.pallas_call(
        kern,
        out_shape=jax.ShapeDtypeStruct((Bp, fpad[5]), jnp.float32),
        in_specs=[pl.BlockSpec(memory_space=pltpu.MemorySpace.VMEM)] * 7,
        out_specs=pl.BlockSpec(memory_space=pltpu.MemorySpace.VMEM),
        compiler_params=pltpu.CompilerParams(vmem_limit_bytes=vmem_limit),
        cost_estimate=pl.CostEstimate(flops=flops,
                                      transcendentals=transcendentals,
                                      bytes_accessed=bytes_accessed),
    )(xp, *weights_bf16, vec_pack)

    return out_pad[:B, :feat[5]]


# ----------------------------------------------------------------------------
# Deterministic synthetic parameters (Linear weights stored as [in, out] = W_pt.T)
# ----------------------------------------------------------------------------
def init_params(key, in_features, hid_features, out_features):
    dims = [
        (in_features, hid_features),
        (hid_features, 2 * hid_features),
        (2 * hid_features, 4 * hid_features),
        (4 * hid_features, 8 * hid_features),
        (8 * hid_features, out_features),
    ]
    params = []
    keys = jax.random.split(key, len(dims) * 4)
    k = 0
    for i, (fin, fout) in enumerate(dims):
        w = 0.1 * jax.random.normal(keys[k], (fin, fout), jnp.float32); k += 1
        b = 0.1 * jax.random.normal(keys[k], (fout,), jnp.float32); k += 1
        params += [w, b]
        if i < 4:  # BN affine params for the 4 LinearBnReLU blocks
            g = 1.0 + 0.1 * jax.random.normal(keys[k], (fout,), jnp.float32); k += 1
            beta = 0.1 * jax.random.normal(keys[k], (fout,), jnp.float32); k += 1
            params += [g, beta]
    return params


# ----------------------------------------------------------------------------
# Pure-JAX reference with PyTorch semantics (bias kept; bf16 MXU inputs,
# f32 BN / sigmoid). The kernel drops the BN-layer bias (exactly cancelled by
# train-mode BN), so it matches this reference up to f32 rounding.
# ----------------------------------------------------------------------------
def reference_forward(x, params):
    h = x
    idx = 0
    for _ in range(4):
        w, b, g, beta = params[idx:idx + 4]; idx += 4
        y = jnp.dot(h.astype(jnp.bfloat16), w.astype(jnp.bfloat16),
                    preferred_element_type=jnp.float32) + b[None, :]
        mean = jnp.mean(y, axis=0, keepdims=True)
        var = jnp.mean(y * y, axis=0, keepdims=True) - mean * mean
        scale = g[None, :] * jax.lax.rsqrt(var + EPS)
        shift = beta[None, :] - mean * scale
        h = jnp.maximum(y * scale + shift, 0.0)
    w, b = params[idx:idx + 2]
    z = jnp.dot(h.astype(jnp.bfloat16), w.astype(jnp.bfloat16),
                preferred_element_type=jnp.float32) + b[None, :]
    return jax.nn.sigmoid(z)


if __name__ == "__main__":
    B, in_features, hid_features, out_features = 8, 16, 32, 16

    key = jax.random.PRNGKey(0)
    kx, kp = jax.random.split(key)
    x = jax.random.normal(kx, (B, in_features), jnp.float32)
    params = init_params(kp, in_features, hid_features, out_features)

    out = generator_forward(x, params)
    out = jax.block_until_ready(out)

    ref = reference_forward(x, params)
    assert out.shape == (B, out_features)
    max_err = float(jnp.max(jnp.abs(out - ref)))
    assert jnp.allclose(out, ref, atol=1e-3, rtol=1e-3), (
        f"mismatch vs JAX reference (max abs err {max_err})")

    print("KERNEL_OK")
</pallas_src>

<mosaic_0001>
module attributes {stable_mosaic.version = 11 : i64} {
  func.func @generator_kernel(%arg0: memref<16x128xbf16, #tpu.memory_space<vmem>>, %arg1: memref<128x128xbf16, #tpu.memory_space<vmem>>, %arg2: memref<128x128xbf16, #tpu.memory_space<vmem>>, %arg3: memref<128x128xbf16, #tpu.memory_space<vmem>>, %arg4: memref<128x256xbf16, #tpu.memory_space<vmem>>, %arg5: memref<256x128xbf16, #tpu.memory_space<vmem>>, %arg6: memref<16x256xf32, #tpu.memory_space<vmem>>, %arg7: memref<16x128xf32, #tpu.memory_space<vmem>>) attributes {dimension_semantics = [], scalar_prefetch = 0 : i64, scratch_operands = 0 : i64, tpu.core_type = #tpu.core_type<tc>} {
    %0 = tpu.iota {dimensions = array<i32: 1>} : vector<1x16xi32>
    %c8_i32 = arith.constant 8 : i32
    %1 = vector.broadcast %c8_i32 : i32 to vector<1x16xi32>
    %2 = arith.cmpi slt, %0, %1 : vector<1x16xi32>
    %3 = arith.extui %2 : vector<1x16xi1> to vector<1x16xi32>
    %4 = arith.sitofp %3 : vector<1x16xi32> to vector<1x16xf32>
    %c0 = arith.constant 0 : index
    %c0_0 = arith.constant 0 : index
    %5 = vector.load %arg0[%c0, %c0_0] : memref<16x128xbf16, #tpu.memory_space<vmem>>, vector<16x128xbf16>
    %c0_1 = arith.constant 0 : index
    %c0_2 = arith.constant 0 : index
    %6 = vector.load %arg6[%c0_1, %c0_2] : memref<16x256xf32, #tpu.memory_space<vmem>>, vector<1x128xf32>
    %c1 = arith.constant 1 : index
    %c0_3 = arith.constant 0 : index
    %7 = vector.load %arg6[%c1, %c0_3] : memref<16x256xf32, #tpu.memory_space<vmem>>, vector<1x128xf32>
    %c0_4 = arith.constant 0 : index
    %c0_5 = arith.constant 0 : index
    %8 = vector.load %arg1[%c0_4, %c0_5] : memref<128x128xbf16, #tpu.memory_space<vmem>>, vector<128x128xbf16>
    %cst = arith.constant dense<0.000000e+00> : vector<16x128xf32>
    %9 = tpu.matmul %5, %8, %cst {dimension_numbers = #tpu.dot_dimension_numbers<[1], [0], [0], [1], [0, 0, 1, 1], [], []>} : vector<16x128xbf16>, vector<128x128xbf16>, vector<16x128xf32> -> vector<16x128xf32>
    %cst_6 = arith.constant dense<0.000000e+00> : vector<1x128xf32>
    %10 = tpu.matmul %4, %9, %cst_6 {dimension_numbers = #tpu.dot_dimension_numbers<[1], [0], [0], [1], [0, 0, 1, 1], [], []>} : vector<1x16xf32>, vector<16x128xf32>, vector<1x128xf32> -> vector<1x128xf32>
    %cst_7 = arith.constant 1.250000e-01 : f32
    %11 = vector.broadcast %cst_7 : f32 to vector<1x128xf32>
    %12 = arith.mulf %10, %11 : vector<1x128xf32>
    %13 = arith.mulf %9, %9 : vector<16x128xf32>
    %cst_8 = arith.constant dense<0.000000e+00> : vector<1x128xf32>
    %14 = tpu.matmul %4, %13, %cst_8 {dimension_numbers = #tpu.dot_dimension_numbers<[1], [0], [0], [1], [0, 0, 1, 1], [], []>} : vector<1x16xf32>, vector<16x128xf32>, vector<1x128xf32> -> vector<1x128xf32>
    %cst_9 = arith.constant 1.250000e-01 : f32
    %15 = vector.broadcast %cst_9 : f32 to vector<1x128xf32>
    %16 = arith.mulf %14, %15 : vector<1x128xf32>
    %17 = arith.mulf %12, %12 : vector<1x128xf32>
    %18 = arith.subf %16, %17 : vector<1x128xf32>
    %cst_10 = arith.constant 0.000000e+00 : f32
    %19 = vector.broadcast %cst_10 : f32 to vector<1x128xf32>
    %20 = arith.maximumf %18, %19 : vector<1x128xf32>
    %cst_11 = arith.constant 9.99999974E-6 : f32
    %21 = vector.broadcast %cst_11 : f32 to vector<1x128xf32>
    %22 = arith.addf %20, %21 : vector<1x128xf32>
    %23 = math.rsqrt %22 : vector<1x128xf32>
    %24 = arith.mulf %6, %23 : vector<1x128xf32>
    %25 = arith.mulf %12, %24 : vector<1x128xf32>
    %26 = arith.subf %7, %25 : vector<1x128xf32>
    %27 = vector.broadcast %24 : vector<1x128xf32> to vector<16x128xf32>
    %28 = arith.mulf %9, %27 : vector<16x128xf32>
    %29 = vector.broadcast %26 : vector<1x128xf32> to vector<16x128xf32>
    %30 = arith.addf %28, %29 : vector<16x128xf32>
    %cst_12 = arith.constant 0.000000e+00 : f32
    %31 = vector.broadcast %cst_12 : f32 to vector<16x128xf32>
    %32 = arith.maximumf %30, %31 : vector<16x128xf32>
    %33 = arith.truncf %32 : vector<16x128xf32> to vector<16x128xbf16>
    %c2 = arith.constant 2 : index
    %c0_13 = arith.constant 0 : index
    %34 = vector.load %arg6[%c2, %c0_13] : memref<16x256xf32, #tpu.memory_space<vmem>>, vector<1x128xf32>
    %c3 = arith.constant 3 : index
    %c0_14 = arith.constant 0 : index
    %35 = vector.load %arg6[%c3, %c0_14] : memref<16x256xf32, #tpu.memory_space<vmem>>, vector<1x128xf32>
    %c0_15 = arith.constant 0 : index
    %c0_16 = arith.constant 0 : index
    %36 = vector.load %arg2[%c0_15, %c0_16] : memref<128x128xbf16, #tpu.memory_space<vmem>>, vector<128x128xbf16>
    %cst_17 = arith.constant dense<0.000000e+00> : vector<16x128xf32>
    %37 = tpu.matmul %33, %36, %cst_17 {dimension_numbers = #tpu.dot_dimension_numbers<[1], [0], [0], [1], [0, 0, 1, 1], [], []>} : vector<16x128xbf16>, vector<128x128xbf16>, vector<16x128xf32> -> vector<16x128xf32>
    %cst_18 = arith.constant dense<0.000000e+00> : vector<1x128xf32>
    %38 = tpu.matmul %4, %37, %cst_18 {dimension_numbers = #tpu.dot_dimension_numbers<[1], [0], [0], [1], [0, 0, 1, 1], [], []>} : vector<1x16xf32>, vector<16x128xf32>, vector<1x128xf32> -> vector<1x128xf32>
    %cst_19 = arith.constant 1.250000e-01 : f32
    %39 = vector.broadcast %cst_19 : f32 to vector<1x128xf32>
    %40 = arith.mulf %38, %39 : vector<1x128xf32>
    %41 = arith.mulf %37, %37 : vector<16x128xf32>
    %cst_20 = arith.constant dense<0.000000e+00> : vector<1x128xf32>
    %42 = tpu.matmul %4, %41, %cst_20 {dimension_numbers = #tpu.dot_dimension_numbers<[1], [0], [0], [1], [0, 0, 1, 1], [], []>} : vector<1x16xf32>, vector<16x128xf32>, vector<1x128xf32> -> vector<1x128xf32>
    %cst_21 = arith.constant 1.250000e-01 : f32
    %43 = vector.broadcast %cst_21 : f32 to vector<1x128xf32>
    %44 = arith.mulf %42, %43 : vector<1x128xf32>
    %45 = arith.mulf %40, %40 : vector<1x128xf32>
    %46 = arith.subf %44, %45 : vector<1x128xf32>
    %cst_22 = arith.constant 0.000000e+00 : f32
    %47 = vector.broadcast %cst_22 : f32 to vector<1x128xf32>
    %48 = arith.maximumf %46, %47 : vector<1x128xf32>
    %cst_23 = arith.constant 9.99999974E-6 : f32
    %49 = vector.broadcast %cst_23 : f32 to vector<1x128xf32>
    %50 = arith.addf %48, %49 : vector<1x128xf32>
    %51 = math.rsqrt %50 : vector<1x128xf32>
    %52 = arith.mulf %34, %51 : vector<1x128xf32>
    %53 = arith.mulf %40, %52 : vector<1x128xf32>
    %54 = arith.subf %35, %53 : vector<1x128xf32>
    %55 = vector.broadcast %52 : vector<1x128xf32> to vector<16x128xf32>
    %56 = arith.mulf %37, %55 : vector<16x128xf32>
    %57 = vector.broadcast %54 : vector<1x128xf32> to vector<16x128xf32>
    %58 = arith.addf %56, %57 : vector<16x128xf32>
    %cst_24 = arith.constant 0.000000e+00 : f32
    %59 = vector.broadcast %cst_24 : f32 to vector<16x128xf32>
    %60 = arith.maximumf %58, %59 : vector<16x128xf32>
    %61 = arith.truncf %60 : vector<16x128xf32> to vector<16x128xbf16>
    %c4 = arith.constant 4 : index
    %c0_25 = arith.constant 0 : index
    %62 = vector.load %arg6[%c4, %c0_25] : memref<16x256xf32, #tpu.memory_space<vmem>>, vector<1x128xf32>
    %c5 = arith.constant 5 : index
    %c0_26 = arith.constant 0 : index
    %63 = vector.load %arg6[%c5, %c0_26] : memref<16x256xf32, #tpu.memory_space<vmem>>, vector<1x128xf32>
    %c0_27 = arith.constant 0 : index
    %c0_28 = arith.constant 0 : index
    %64 = vector.load %arg3[%c0_27, %c0_28] : memref<128x128xbf16, #tpu.memory_space<vmem>>, vector<128x128xbf16>
    %cst_29 = arith.constant dense<0.000000e+00> : vector<16x128xf32>
    %65 = tpu.matmul %61, %64, %cst_29 {dimension_numbers = #tpu.dot_dimension_numbers<[1], [0], [0], [1], [0, 0, 1, 1], [], []>} : vector<16x128xbf16>, vector<128x128xbf16>, vector<16x128xf32> -> vector<16x128xf32>
    %cst_30 = arith.constant dense<0.000000e+00> : vector<1x128xf32>
    %66 = tpu.matmul %4, %65, %cst_30 {dimension_numbers = #tpu.dot_dimension_numbers<[1], [0], [0], [1], [0, 0, 1, 1], [], []>} : vector<1x16xf32>, vector<16x128xf32>, vector<1x128xf32> -> vector<1x128xf32>
    %cst_31 = arith.constant 1.250000e-01 : f32
    %67 = vector.broadcast %cst_31 : f32 to vector<1x128xf32>
    %68 = arith.mulf %66, %67 : vector<1x128xf32>
    %69 = arith.mulf %65, %65 : vector<16x128xf32>
    %cst_32 = arith.constant dense<0.000000e+00> : vector<1x128xf32>
    %70 = tpu.matmul %4, %69, %cst_32 {dimension_numbers = #tpu.dot_dimension_numbers<[1], [0], [0], [1], [0, 0, 1, 1], [], []>} : vector<1x16xf32>, vector<16x128xf32>, vector<1x128xf32> -> vector<1x128xf32>
    %cst_33 = arith.constant 1.250000e-01 : f32
    %71 = vector.broadcast %cst_33 : f32 to vector<1x128xf32>
    %72 = arith.mulf %70, %71 : vector<1x128xf32>
    %73 = arith.mulf %68, %68 : vector<1x128xf32>
    %74 = arith.subf %72, %73 : vector<1x128xf32>
    %cst_34 = arith.constant 0.000000e+00 : f32
    %75 = vector.broadcast %cst_34 : f32 to vector<1x128xf32>
    %76 = arith.maximumf %74, %75 : vector<1x128xf32>
    %cst_35 = arith.constant 9.99999974E-6 : f32
    %77 = vector.broadcast %cst_35 : f32 to vector<1x128xf32>
    %78 = arith.addf %76, %77 : vector<1x128xf32>
    %79 = math.rsqrt %78 : vector<1x128xf32>
    %80 = arith.mulf %62, %79 : vector<1x128xf32>
    %81 = arith.mulf %68, %80 : vector<1x128xf32>
    %82 = arith.subf %63, %81 : vector<1x128xf32>
    %83 = vector.broadcast %80 : vector<1x128xf32> to vector<16x128xf32>
    %84 = arith.mulf %65, %83 : vector<16x128xf32>
    %85 = vector.broadcast %82 : vector<1x128xf32> to vector<16x128xf32>
    %86 = arith.addf %84, %85 : vector<16x128xf32>
    %cst_36 = arith.constant 0.000000e+00 : f32
    %87 = vector.broadcast %cst_36 : f32 to vector<16x128xf32>
    %88 = arith.maximumf %86, %87 : vector<16x128xf32>
    %89 = arith.truncf %88 : vector<16x128xf32> to vector<16x128xbf16>
    %c6 = arith.constant 6 : index
    %c0_37 = arith.constant 0 : index
    %90 = vector.load %arg6[%c6, %c0_37] : memref<16x256xf32, #tpu.memory_space<vmem>>, vector<1x256xf32>
    %c7 = arith.constant 7 : index
    %c0_38 = arith.constant 0 : index
    %91 = vector.load %arg6[%c7, %c0_38] : memref<16x256xf32, #tpu.memory_space<vmem>>, vector<1x256xf32>
    %c0_39 = arith.constant 0 : index
    %c0_40 = arith.constant 0 : index
    %92 = vector.load %arg4[%c0_39, %c0_40] : memref<128x256xbf16, #tpu.memory_space<vmem>>, vector<128x256xbf16>
    %cst_41 = arith.constant dense<0.000000e+00> : vector<16x256xf32>
    %93 = tpu.matmul %89, %92, %cst_41 {dimension_numbers = #tpu.dot_dimension_numbers<[1], [0], [0], [1], [0, 0, 1, 1], [], []>} : vector<16x128xbf16>, vector<128x256xbf16>, vector<16x256xf32> -> vector<16x256xf32>
    %cst_42 = arith.constant dense<0.000000e+00> : vector<1x256xf32>
    %94 = tpu.matmul %4, %93, %cst_42 {dimension_numbers = #tpu.dot_dimension_numbers<[1], [0], [0], [1], [0, 0, 1, 1], [], []>} : vector<1x16xf32>, vector<16x256xf32>, vector<1x256xf32> -> vector<1x256xf32>
    %cst_43 = arith.constant 1.250000e-01 : f32
    %95 = vector.broadcast %cst_43 : f32 to vector<1x256xf32>
    %96 = arith.mulf %94, %95 : vector<1x256xf32>
    %97 = arith.mulf %93, %93 : vector<16x256xf32>
    %cst_44 = arith.constant dense<0.000000e+00> : vector<1x256xf32>
    %98 = tpu.matmul %4, %97, %cst_44 {dimension_numbers = #tpu.dot_dimension_numbers<[1], [0], [0], [1], [0, 0, 1, 1], [], []>} : vector<1x16xf32>, vector<16x256xf32>, vector<1x256xf32> -> vector<1x256xf32>
    %cst_45 = arith.constant 1.250000e-01 : f32
    %99 = vector.broadcast %cst_45 : f32 to vector<1x256xf32>
    %100 = arith.mulf %98, %99 : vector<1x256xf32>
    %101 = arith.mulf %96, %96 : vector<1x256xf32>
    %102 = arith.subf %100, %101 : vector<1x256xf32>
    %cst_46 = arith.constant 0.000000e+00 : f32
    %103 = vector.broadcast %cst_46 : f32 to vector<1x256xf32>
    %104 = arith.maximumf %102, %103 : vector<1x256xf32>
    %cst_47 = arith.constant 9.99999974E-6 : f32
    %105 = vector.broadcast %cst_47 : f32 to vector<1x256xf32>
    %106 = arith.addf %104, %105 : vector<1x256xf32>
    %107 = math.rsqrt %106 : vector<1x256xf32>
    %108 = arith.mulf %90, %107 : vector<1x256xf32>
    %109 = arith.mulf %96, %108 : vector<1x256xf32>
    %110 = arith.subf %91, %109 : vector<1x256xf32>
    %111 = vector.broadcast %108 : vector<1x256xf32> to vector<16x256xf32>
    %112 = arith.mulf %93, %111 : vector<16x256xf32>
    %113 = vector.broadcast %110 : vector<1x256xf32> to vector<16x256xf32>
    %114 = arith.addf %112, %113 : vector<16x256xf32>
    %cst_48 = arith.constant 0.000000e+00 : f32
    %115 = vector.broadcast %cst_48 : f32 to vector<16x256xf32>
    %116 = arith.maximumf %114, %115 : vector<16x256xf32>
    %117 = arith.truncf %116 : vector<16x256xf32> to vector<16x256xbf16>
    %c8 = arith.constant 8 : index
    %c0_49 = arith.constant 0 : index
    %118 = vector.load %arg6[%c8, %c0_49] : memref<16x256xf32, #tpu.memory_space<vmem>>, vector<1x128xf32>
    %c0_50 = arith.constant 0 : index
    %c0_51 = arith.constant 0 : index
    %119 = vector.load %arg5[%c0_50, %c0_51] : memref<256x128xbf16, #tpu.memory_space<vmem>>, vector<256x128xbf16>
    %cst_52 = arith.constant dense<0.000000e+00> : vector<16x128xf32>
    %120 = tpu.matmul %117, %119, %cst_52 {dimension_numbers = #tpu.dot_dimension_numbers<[1], [0], [0], [1], [0, 0, 1, 1], [], []>} : vector<16x256xbf16>, vector<256x128xbf16>, vector<16x128xf32> -> vector<16x128xf32>
    %121 = vector.broadcast %118 : vector<1x128xf32> to vector<16x128xf32>
    %122 = arith.addf %120, %121 : vector<16x128xf32>
    %cst_53 = arith.constant 5.000000e-01 : f32
    %123 = vector.broadcast %cst_53 : f32 to vector<16x128xf32>
    %124 = arith.mulf %123, %122 : vector<16x128xf32>
    %125 = math.tanh %124 : vector<16x128xf32>
    %cst_54 = arith.constant 1.000000e+00 : f32
    %126 = vector.broadcast %cst_54 : f32 to vector<16x128xf32>
    %127 = arith.addf %125, %126 : vector<16x128xf32>
    %cst_55 = arith.constant 5.000000e-01 : f32
    %128 = vector.broadcast %cst_55 : f32 to vector<16x128xf32>
    %129 = arith.mulf %128, %127 : vector<16x128xf32>
    %c0_56 = arith.constant 0 : index
    %c0_57 = arith.constant 0 : index
    %130 = vector.load %arg7[%c0_56, %c0_57] : memref<16x128xf32, #tpu.memory_space<vmem>>, vector<16x128xf32>
    tpu.vector_store %arg7[%c0_56, %c0_57], %129 {strides = array<i32>} : memref<16x128xf32, #tpu.memory_space<vmem>>, vector<16x128xf32>,
    return
  }
}

</mosaic_0001>

<bundles_post_ra>
// kernel: tpu_custom_call.1
= control target key start
LH: loop header
LB: loop body
LE: loop exit
PB: predicated region body
PF: predicated region fallthrough
CT: control target
= control target key end

     0   :  { %12 = vsyncpa [#allocation3], 0  ;;  %s2409_s0 = inlined_call_operand.hbm [shape: bf16[16,128], index: 0, kind: input, shape index: {}]   ;;  %s2410_s1 = inlined_call_operand.hbm [shape: bf16[128,128], index: 1, kind: input, shape index: {}]   ;;  %s2411_s2 = inlined_call_operand.hbm [shape: bf16[128,128], index: 2, kind: input, shape index: {}]   ;;  %s2412_s3 = inlined_call_operand.hbm [shape: bf16[128,128], index: 3, kind: input, shape index: {}]   ;;  %s2413_s4 = inlined_call_operand.hbm [shape: bf16[128,256], index: 4, kind: input, shape index: {}]   ;;  %s2414_s5 = inlined_call_operand.hbm [shape: bf16[256,128], index: 5, kind: input, shape index: {}]   ;;  %s2415_s6 = inlined_call_operand.hbm [shape: f32[16,256], index: 6, kind: input, shape index: {}]   ;;  %s2416_s7 = inlined_call_operand.hbm [shape: f32[16,128], index: 7, kind: output, shape index: {}]  }
   0x1   :  { %13 = vsyncpa [#allocation6], 0 }
   0x2   :  { %14 = vsyncpa [#allocation9], 0 }
   0x3   :  { %15 = vsyncpa [#allocation12], 0 }
   0x4   :  { %16 = vsyncpa [#allocation4], 0  ;;  %s2086_s24 = smov [#allocation5]   ;;  %s2087_s26 = smov [#allocation8]  }
   0x5   :  { %s34_s25 = sshll.u32 %s2086_s24, 4  ;;  %s58_s27 = sshll.u32 %s2087_s26, 4  ;;  %s35_s25 = int_to_ptr.vmem [resolvable:$true] %s34_s25  ;;  %s2145_s27 = int_to_ptr.vmem [resolvable:$true] %s58_s27 }
   0x6   :  { %s1900_s30 = scalar_lea.hbm %s2410_s1, 1024 }
   0x7   :  { %p1901_p0 = scmp.ne.s32.totalorder %s2410_s1, %s1900_s30  ;;  %p1904_p1 = scmp.lt.u32.totalorder %s1900_s30, %s2410_s1 }
   0x9   :  { %p1906_p2 = pnand %p1904_p1, %p1901_p0 }
   0xb   :  { %1909 = shalt.err (!%p1906_p2)
}
   0xc   :  { %s1910_s12 = scalar_lea.vmem %s35_s25, 1024  ;;  %p1915_p4 = scmp.lt.s32.totalorder %s35_s25, %s35_s25 }
   0xd   :  { %p1911_p3 = scmp.ne.s32.totalorder %s35_s25, %s1910_s12  ;;  %p1916_p5 = scmp.lt.s32.totalorder %s1910_s12, %s1910_s12 }
   0xf   :  { %p1917_p6 = por %p1916_p5, %p1915_p4 }
  0x11   :  { %p1918_p7 = pnand %p1917_p6, %p1911_p3 }
  0x13   :  { %1921 = shalt.err (!%p1918_p7)
}
  0x14   :  { %s2088_s13 = smov 64   ;;  %s2089_s14 = smov 4  }
  0x15   :  { %40 = dma.hbm_to_vmem [thread:$0]  %s2410_s1, 1024, %s35_s25, [#allocation6], %s2088_s13, %s2088_s13, %s2089_s14  }
  0x16   :  { %s1922_s19 = scalar_lea.hbm %s2412_s3, 1024 }
  0x17   :  { %p1923_p8 = scmp.ne.s32.totalorder %s2412_s3, %s1922_s19  ;;  %p1926_p9 = scmp.lt.u32.totalorder %s1922_s19, %s2412_s3 }
  0x19   :  { %p1928_p10 = pnand %p1926_p9, %p1923_p8 }
  0x1b   :  { %1931 = shalt.err (!%p1928_p10)
}
  0x1c   :  { %s1932_s24 = scalar_lea.vmem %s2145_s27, 1024  ;;  %p1937_p12 = scmp.lt.s32.totalorder %s2145_s27, %s2145_s27 }
  0x1d   :  { %p1933_p11 = scmp.ne.s32.totalorder %s2145_s27, %s1932_s24  ;;  %p1938_p13 = scmp.lt.s32.totalorder %s1932_s24, %s1932_s24 }
  0x1f   :  { %p1939_p0 = por %p1938_p13, %p1937_p12 }
  0x21   :  { %p1940_p1 = pnand %p1939_p0, %p1933_p11 }
  0x23   :  { %1943 = shalt.err (!%p1940_p1)
}
  0x24   :  { %64 = dma.hbm_to_vmem [thread:$0]  %s2412_s3, 1024, %s2145_s27, [#allocation9], %s2088_s13, %s2088_s13, %s2089_s14  }
  0x25   :  { %s2090_s26 = smov [#allocation11]   ;;  %s2091_s29 = smov [#allocation2]  }
  0x26   :  { %s82_s28 = sshll.u32 %s2090_s26, 4  ;;  %s22_s30 = sshll.u32 %s2091_s29, 4  ;;  %s83_s28 = int_to_ptr.vmem [resolvable:$true] %s82_s28  ;;  %s2182_s30 = int_to_ptr.vmem [resolvable:$true] %s22_s30 }
  0x27   :  { %s1944_s10 = scalar_lea.hbm %s2414_s5, 2048 }
  0x28   :  { %p1945_p2 = scmp.ne.s32.totalorder %s2414_s5, %s1944_s10  ;;  %p1948_p3 = scmp.lt.u32.totalorder %s1944_s10, %s2414_s5 }
  0x2a   :  { %p1950_p4 = pnand %p1948_p3, %p1945_p2 }
  0x2c   :  { %1953 = shalt.err (!%p1950_p4)
}
  0x2d   :  { %s1954_s3 = scalar_lea.vmem %s83_s28, 2048  ;;  %p1959_p6 = scmp.lt.s32.totalorder %s83_s28, %s83_s28 }
  0x2e   :  { %p1955_p5 = scmp.ne.s32.totalorder %s83_s28, %s1954_s3  ;;  %p1960_p7 = scmp.lt.s32.totalorder %s1954_s3, %s1954_s3 }
  0x30   :  { %p1961_p8 = por %p1960_p7, %p1959_p6 }
  0x32   :  { %p1962_p9 = pnand %p1961_p8, %p1955_p5 }
  0x34   :  { %1965 = shalt.err (!%p1962_p9)
}
  0x35   :  { %88 = dma.hbm_to_vmem [thread:$0]  %s2414_s5, 2048, %s83_s28, [#allocation12], %s2088_s13, %s2088_s13, %s2089_s14  }
  0x36   :  { %s1966_s20 = scalar_lea.hbm %s2409_s0, 128 }
  0x37   :  { %p1967_p10 = scmp.ne.s32.totalorder %s2409_s0, %s1966_s20  ;;  %p1970_p11 = scmp.lt.u32.totalorder %s1966_s20, %s2409_s0 }
  0x39   :  { %p1972_p12 = pnand %p1970_p11, %p1967_p10 }
  0x3b   :  { %1975 = shalt.err (!%p1972_p12)
}
  0x3c   :  { %s1976_s1 = scalar_lea.vmem %s2182_s30, 128  ;;  %p1981_p0 = scmp.lt.s32.totalorder %s2182_s30, %s2182_s30 }
  0x3d   :  { %p1977_p13 = scmp.ne.s32.totalorder %s2182_s30, %s1976_s1  ;;  %p1982_p1 = scmp.lt.s32.totalorder %s1976_s1, %s1976_s1 }
  0x3f   :  { %p1983_p2 = por %p1982_p1, %p1981_p0 }
  0x41   :  { %p1984_p3 = pnand %p1983_p2, %p1977_p13 }
  0x43   :  { %1987 = shalt.err (!%p1984_p3)
}
  0x44   :  { %28 = dma.hbm_to_vmem [thread:$0]  %s2409_s0, 128, %s2182_s30, [#allocation3], %s2088_s13, %s2088_s13, %s2089_s14  }
  0x45   :  { %s2092_s26 = smov [#allocation7]   ;;  %s2093_s29 = smov [#allocation10]  }
  0x46   :  { %s46_s28 = sshll.u32 %s2092_s26, 4  ;;  %s70_s8 = sshll.u32 %s2093_s29, 4  ;;  %s47_s28 = int_to_ptr.vmem [resolvable:$true] %s46_s28  ;;  %s2219_s8 = int_to_ptr.vmem [resolvable:$true] %s70_s8 }
  0x47   :  { %s1988_s11 = scalar_lea.hbm %s2411_s2, 1024 }
  0x48   :  { %p1989_p4 = scmp.ne.s32.totalorder %s2411_s2, %s1988_s11  ;;  %p1992_p5 = scmp.lt.u32.totalorder %s1988_s11, %s2411_s2 }
  0x4a   :  { %p1994_p6 = pnand %p1992_p5, %p1989_p4 }
  0x4c   :  { %1997 = shalt.err (!%p1994_p6)
}
  0x4d   :  { %s1998_s0 = scalar_lea.vmem %s47_s28, 1024  ;;  %p2003_p8 = scmp.lt.s32.totalorder %s47_s28, %s47_s28 }
  0x4e   :  { %p1999_p7 = scmp.ne.s32.totalorder %s47_s28, %s1998_s0  ;;  %p2004_p9 = scmp.lt.s32.totalorder %s1998_s0, %s1998_s0 }
  0x50   :  { %p2005_p10 = por %p2004_p9, %p2003_p8 }
  0x52   :  { %p2006_p11 = pnand %p2005_p10, %p1999_p7 }
  0x54   :  { %2009 = shalt.err (!%p2006_p11)
}
  0x55   :  { %52 = dma.hbm_to_vmem [thread:$0]  %s2411_s2, 1024, %s47_s28, [#allocation6], %s2088_s13, %s2088_s13, %s2089_s14  }
  0x56   :  { %s2010_s19 = scalar_lea.hbm %s2413_s4, 2048 }
  0x57   :  { %p2011_p12 = scmp.ne.s32.totalorder %s2413_s4, %s2010_s19  ;;  %p2014_p13 = scmp.lt.u32.totalorder %s2010_s19, %s2413_s4 }
  0x59   :  { %p2016_p0 = pnand %p2014_p13, %p2011_p12 }
  0x5b   :  { %2019 = shalt.err (!%p2016_p0)
}
  0x5c   :  { %s2020_s24 = scalar_lea.vmem %s2219_s8, 2048  ;;  %p2025_p2 = scmp.lt.s32.totalorder %s2219_s8, %s2219_s8 }
  0x5d   :  { %p2021_p1 = scmp.ne.s32.totalorder %s2219_s8, %s2020_s24  ;;  %p2026_p3 = scmp.lt.s32.totalorder %s2020_s24, %s2020_s24 }
  0x5f   :  { %p2027_p4 = por %p2026_p3, %p2025_p2 }
  0x61   :  { %p2028_p5 = pnand %p2027_p4, %p2021_p1 }
  0x63   :  { %2031 = shalt.err (!%p2028_p5)
}
  0x64   :  { %s2094_s2 = smov 128   ;;  %s2095_s13 = smov 8  }
  0x65   :  { %76 = dma.hbm_to_vmem [thread:$0]  %s2413_s4, 2048, %s2219_s8, [#allocation9], %s2094_s2, %s2094_s2, %s2095_s13  }
  0x66   :  { %s2096_s5 = smov [#allocation13]   ;;  %s2032_s29 = scalar_lea.hbm %s2415_s6, 512 }
  0x67   :  { %s94_s25 = sshll.u32 %s2096_s5, 4  ;;  %p2033_p6 = scmp.ne.s32.totalorder %s2415_s6, %s2032_s29  ;;  %s95_s25 = int_to_ptr.vmem [resolvable:$true] %s94_s25 }
  0x68   :  { %p2036_p7 = scmp.lt.u32.totalorder %s2032_s29, %s2415_s6 }
  0x6a   :  { %p2038_p8 = pnand %p2036_p7, %p2033_p6 }
  0x6c   :  { %2041 = shalt.err (!%p2038_p8)
}
  0x6d   :  { %s2042_s15 = scalar_lea.vmem %s95_s25, 512  ;;  %p2047_p10 = scmp.lt.s32.totalorder %s95_s25, %s95_s25 }
  0x6e   :  { %p2043_p9 = scmp.ne.s32.totalorder %s95_s25, %s2042_s15  ;;  %p2048_p11 = scmp.lt.s32.totalorder %s2042_s15, %s2042_s15 }
  0x70   :  { %p2049_p12 = por %p2048_p11, %p2047_p10 }
  0x72   :  { %p2050_p13 = pnand %p2049_p12, %p2043_p9 }
  0x74   :  { %2053 = shalt.err (!%p2050_p13)
}
  0x75   :  { %s2097_s4 = smov 256   ;;  %s2098_s8 = smov 16  }
  0x76   :  { %100 = dma.hbm_to_vmem [thread:$0]  %s2415_s6, 512, %s95_s25, [#allocation12], %s2097_s4, %s2097_s4, %s2098_s8  }
  0x77   :  { %2076 = dma.done.wait [#allocation3], 128  }
  0x78   :  { %2077 = vsyncadd [#allocation3], 4294967168 }
  0x79   :  { %2078 = dma.done.wait [#allocation6], 2048  }
  0x7a   :  { %2079 = vsyncadd [#allocation6], 4294965248 }
  0x7b   :  { %2080 = dma.done.wait [#allocation9], 3072  }
  0x7c   :  { %2081 = vsyncadd [#allocation9], 4294964224 }
  0x7d   :  { %2082 = dma.done.wait [#allocation12], 2560  }
  0x7e   :  { %2083 = vsyncadd [#allocation12], 4294964736  ;;  %v2099_v0 = vmov 0.0   ;;  %vm2100_vm0 = vmmov 0   ;;  %v1821_v1 = vld [vmem:[#allocation5] sm:$0xff]   ;;  %v1822_v2 = vld [vmem:[#allocation5 + $0x8] sm:$0xff]   ;;  %v123_v11 = vlaneseq }
  0x7f   :  { %1674 = vmatprep.subr.bf16.mxu0 %v2099_v0  ;;  %1690 = vmatprep.mubr.msk.bf16.mxu0 %vm2100_vm0, %v2099_v0  ;;  %v1823_v3 = vld [vmem:[#allocation5 + $0x10] sm:$0xff]   ;;  %v1824_v4 = vld [vmem:[#allocation5 + $0x18] sm:$0xff]   ;;  %v1825_v5 = vld [vmem:[#allocation5 + $0x20] sm:$0xff]   ;;  %v2101_v10 = vmov 0.0|0.0   ;;  %vm243_vm2 = vcmask 130048   ;;  %s2104_s6 = smov [#allocation14]  }
  0x80   :  { %1698 = vmatprep.mubr.msk.f32.mxu1 %vm2100_vm0, %v2099_v0  ;;  %1675 = vmatpush3.bf16.msra.mxu0 %v1821_v1  ;;  %v1826_v6 = vld [vmem:[#allocation5 + $0x28] sm:$0xff]   ;;  %v1827_v7 = vld [vmem:[#allocation5 + $0x30] sm:$0xff]   ;;  %v1828_v8 = vld [vmem:[#allocation5 + $0x38] sm:$0xff]   ;;  %v124_v12 = vand.u32 127, %v123_v11  ;;  %v2307_v40 = vshrl.u32 %v123_v11, 7  ;;  %s1526_s0 = sshll.u32 %s2104_s6, 4  ;;  %s1527_s0 = int_to_ptr.vmem [resolvable:$true] %s1526_s0 }
  0x81   :  { %1676 = vmatprep.subr.bf16.mxu0 %v2099_v0  ;;  %v1829_v9 = vld [vmem:[#allocation2] sm:$0xff]   ;;  %1776 = vmatprep.subr.bf16.mxu1 %v2101_v10  ;;  %v1830_v22 = vld [vmem:[#allocation7] sm:$0xff]   ;;  %v1831_v23 = vld [vmem:[#allocation7 + $0x8] sm:$0xff]   ;;  %s2054_s30 = scalar_lea.vmem %s1527_s0, 256  ;;  %p2059_p1 = scmp.lt.s32.totalorder %s1527_s0, %s1527_s0 }
  0x82   :  { %vm125_vm1 = vcmp.lt.s32.totalorder %v124_v12, 8  ;;  %v1832_v24 = vld [vmem:[#allocation7 + $0x10] sm:$0xff]   ;;  %v1833_v25 = vld [vmem:[#allocation7 + $0x18] sm:$0xff]   ;;  %v1834_v26 = vld [vmem:[#allocation7 + $0x20] sm:$0xff]   ;;  %v2310_v42 = vsub.s32 0, %v2307_v40  ;;  %p2055_p0 = scmp.ne.s32.totalorder %s1527_s0, %s2054_s30  ;;  %p2060_p2 = scmp.lt.s32.totalorder %s2054_s30, %s2054_s30 }
  0x83   :  { %v2287_v21 = vsel %vm125_vm1, 1.0, %v2099_v0  ;;  %v1835_v27 = vld [vmem:[#allocation7 + $0x28] sm:$0xff]   ;;  %v1836_v28 = vld [vmem:[#allocation7 + $0x30] sm:$0xff]   ;;  %v1837_v29 = vld [vmem:[#allocation7 + $0x38] sm:$0xff]  }
  0x84   :  { %1677 = vmatpush3.bf16.msra.mxu0 %v1822_v2  ;;  %v130_v41 = vld [vmem:[#allocation13] ss:$0 sm:$0xff]  ;;  %v131_v45 = vld [vmem:[#allocation13 + $0x1] ss:$0 sm:$0xff]  ;;  %p2061_p3 = por %p2060_p2, %p2059_p1 }
  0x85   :  { %1678 = vmatprep.subr.bf16.mxu0 %v2099_v0  ;;  %v1838_v2 = vld [vmem:[#allocation8] sm:$0xff]  }
  0x86   :  { %p2062_p4 = pnand %p2061_p3, %p2055_p0 }
  0x88   :  { %1679 = vmatpush3.bf16.msra.mxu0 %v1823_v3  ;;  %v1839_v3 = vld [vmem:[#allocation8 + $0x8] sm:$0xff]  }
  0x89   :  { %1680 = vmatprep.subr.bf16.mxu0 %v2099_v0 }
  0x8c   :  { %1681 = vmatpush3.bf16.msra.mxu0 %v1824_v4  ;;  %v1840_v4 = vld [vmem:[#allocation8 + $0x10] sm:$0xff]  }
  0x8d   :  { %1682 = vmatprep.subr.bf16.mxu0 %v2099_v0 }
  0x90   :  { %1683 = vmatpush3.bf16.msra.mxu0 %v1825_v5  ;;  %v1841_v5 = vld [vmem:[#allocation8 + $0x18] sm:$0xff]  }
  0x91   :  { %1684 = vmatprep.subr.bf16.mxu0 %v2099_v0 }
  0x94   :  { %1685 = vmatpush3.bf16.msra.mxu0 %v1826_v6  ;;  %v1842_v6 = vld [vmem:[#allocation8 + $0x20] sm:$0xff]  }
  0x95   :  { %1686 = vmatprep.subr.bf16.mxu0 %v2099_v0 }
  0x98   :  { %1687 = vmatpush3.bf16.msra.mxu0 %v1827_v7  ;;  %v1843_v7 = vld [vmem:[#allocation8 + $0x28] sm:$0xff]  }
  0x99   :  { %1688 = vmatprep.subr.bf16.mxu0 %v2099_v0 }
  0x9c   :  { %1689 = vmatpush3.bf16.msra.mxu0 %v1828_v8  ;;  %v1844_v8 = vld [vmem:[#allocation8 + $0x30] sm:$0xff]  }
  0x9f   :  { %1691 = vmatmul.mubr.bf16.vlgmr.msra.gmra.mrb[0].mxu0 %v1829_v9  ;;  %v1845_v9 = vld [vmem:[#allocation8 + $0x38] sm:$0xff]  }
 0x172   :  { %v2281_v13 = vpop.f32.mrb[0].mxu0 }
 0x173   :  { %v1692_v14 = vpop.f32.mrb[1].mxu0  ;;  %v318_v16 = vmul.f32 %v2281_v13, %v2281_v13 }
 0x174   :  { %v239_v15 = vpop.f32.mrb[2].mxu0 }
 0x175   :  { %v319_v17 = vmul.f32 %v239_v15, %v239_v15  ;;  %v1693_v18 = vpop.f32.mrb[3].mxu0  ;;  %v1777_v19 = vpack.c.bf16 %v239_v15, %v2281_v13 }
 0x177   :  { %v1780_v20 = vpack.c.bf16 %v319_v17, %v318_v16  ;;  %1778 = vmatpush3.bf16.msra.mxu1 %v1777_v19 }
 0x178   :  { %1779 = vmatprep.subr.bf16.mxu1 %v2101_v10 }
 0x17a   :  { %1699 = vmatmul.mubr.msk.f32.vlgmr.msra.gmra.mrb[0].mxu1 %vm243_vm2, %v2287_v21 }
 0x17b   :  { %1781 = vmatpush3.bf16.msra.mxu1 %v1780_v20  ;;  %1705 = vmatprep.mubr.msk.f32.mxu1 %vm2100_vm0, %v2099_v0 }
 0x17c   :  { %1708 = vmatprep.subr.bf16.mxu1 %v2099_v0 }
 0x17e   :  { %1706 = vmatmul.mubr.msk.f32.vlgmr.msra.gmra.mrb[2].mxu1 %vm243_vm2, %v2287_v21 }
 0x17f   :  { %1724 = vmatprep.mubr.msk.bf16.mxu1 %vm2100_vm0, %v2099_v0  ;;  %1709 = vmatpush3.bf16.msra.mxu1 %v1830_v22  ;;  %v414_v22 = vld [vmem:[#allocation13 + $0x2] ss:$0 sm:$0xff] }
 0x180   :  { %1710 = vmatprep.subr.bf16.mxu1 %v2099_v0 }
 0x183   :  { %1711 = vmatpush3.bf16.msra.mxu1 %v1831_v23 }
 0x184   :  { %1712 = vmatprep.subr.bf16.mxu1 %v2099_v0 }
 0x187   :  { %1713 = vmatpush3.bf16.msra.mxu1 %v1832_v24 }
 0x188   :  { %1714 = vmatprep.subr.bf16.mxu1 %v2099_v0 }
 0x18b   :  { %1715 = vmatpush3.bf16.msra.mxu1 %v1833_v25  ;;  %v415_v25 = vld [vmem:[#allocation13 + $0x3] ss:$0 sm:$0xff] }
 0x18c   :  { %1716 = vmatprep.subr.bf16.mxu1 %v2099_v0 }
 0x18f   :  { %1717 = vmatpush3.bf16.msra.mxu1 %v1834_v26 }
 0x190   :  { %1718 = vmatprep.subr.bf16.mxu1 %v2099_v0 }
 0x193   :  { %1719 = vmatpush3.bf16.msra.mxu1 %v1835_v27 }
 0x194   :  { %1720 = vmatprep.subr.bf16.mxu1 %v2099_v0 }
 0x197   :  { %1721 = vmatpush3.bf16.msra.mxu1 %v1836_v28 }
 0x198   :  { %1722 = vmatprep.subr.bf16.mxu1 %v2099_v0 }
 0x19b   :  { %1723 = vmatpush3.bf16.msra.mxu1 %v1837_v29 }
 0x19c   :  { %1782 = vmatprep.subr.bf16.mxu1 %v2101_v10 }
 0x24d   :  { %v313_v30 = vpop.f32.mrb[0].mxu1 }
 0x24e   :  { %v317_v31 = vmul.f32 0.125, %v313_v30  ;;  %v1700_v32 = vpop.f32.mrb[1].mxu1 }
 0x250   :  { %v391_v34 = vmul.f32 %v317_v31, %v317_v31 }
 0x251   :  { %v386_v33 = vpop.f32.mrb[2].mxu1 }
 0x252   :  { %v390_v35 = vmul.f32 0.125, %v386_v33  ;;  %v1707_v36 = vpop.f32.mrb[3].mxu1 }
 0x254   :  { %v392_v37 = vsub.f32 %v390_v35, %v391_v34 }
 0x256   :  { %v393_v38 = vmax.f32 %v392_v37, 0.0 }
 0x258   :  { %v394_v39 = vadd.f32 1e-05, %v393_v38 }
 0x25a   :  { %1886 = vrsqrt.f32 %v394_v39 }
 0x264   :  { %v1887_v43 = vpop.eup %1886 }
 0x265   :  { %v396_v44 = vmul.f32 %v1887_v43, %v130_v41 }
 0x267   :  { %v397_v46 = vmul.f32 %v396_v44, %v317_v31  ;;  %v402_v47 = vrot.slane %v396_v44, %v2310_v42 }
 0x269   :  { %v398_v48 = vsub.f32 %v131_v45, %v397_v46  ;;  %v403_v49 = vmul.f32 %v402_v47, %v2281_v13  ;;  %v404_v50 = vmul.f32 %v402_v47, %v239_v15  ;;  %v1848_v47 = vld [vmem:[#allocation10 + $0x4] ss:$8 sps:$4 sm:$0xff]  }
 0x26a   :  { %1062 = vmatprep.subr.bf16.mxu0 %v1848_v47  ;;  %v1876_v47 = vld [vmem:[#allocation11 + $0x58] sm:$0xff]  }
 0x26b   :  { %v408_v51 = vrot.slane %v398_v48, %v2310_v42  ;;  %v1846_v48 = vld [vmem:[#allocation10] ss:$8 sps:$4 sm:$0xff]  }
 0x26c   :  { %1063 = vmatpush1.bf16.msra.mxu0 %v1846_v48  ;;  %v1877_v48 = vld [vmem:[#allocation11 + $0x18] sm:$0xff]  }
 0x26d   :  { %v409_v52 = vadd.f32 %v408_v51, %v403_v49  ;;  %v410_v53 = vadd.f32 %v408_v51, %v404_v50  ;;  %v1851_v49 = vld [vmem:[#allocation10 + $0x14] ss:$8 sps:$4 sm:$0xff]   ;;  %v1849_v50 = vld [vmem:[#allocation10 + $0x10] ss:$8 sps:$4 sm:$0xff]   ;;  %v1852_v51 = vld [vmem:[#allocation10 + $0x20] ss:$8 sps:$4 sm:$0xff]  }
 0x26e   :  { %1064 = vmatprep.subr.bf16.mxu0 %v1851_v49  ;;  %v1878_v49 = vld [vmem:[#allocation11 + $0x60] sm:$0xff]  }
 0x26f   :  { %v411_v54 = vmax.f32 %v409_v52, 0.0  ;;  %v412_v55 = vmax.f32 %v410_v53, 0.0  ;;  %v1857_v52 = vld [vmem:[#allocation10 + $0x34] ss:$8 sps:$4 sm:$0xff]   ;;  %v1855_v53 = vld [vmem:[#allocation10 + $0x30] ss:$8 sps:$4 sm:$0xff]  }
 0x270   :  { %1065 = vmatpush1.bf16.msra.mxu0 %v1849_v50  ;;  %v1881_v50 = vld [vmem:[#allocation11 + $0x28] sm:$0xff]  }
 0x271   :  { %v413_v56 = vpack.c.bf16 %v412_v55, %v411_v54  ;;  %v1860_v54 = vld [vmem:[#allocation10 + $0x44] ss:$8 sps:$4 sm:$0xff]   ;;  %v1858_v55 = vld [vmem:[#allocation10 + $0x40] ss:$8 sps:$4 sm:$0xff]  }
 0x273   :  { %1725 = vmatmul.mubr.bf16.vlgmr.msra.gmra.mrb[4].mxu1 %v413_v56  ;;  %v1861_v56 = vld [vmem:[#allocation10 + $0x50] ss:$8 sps:$4 sm:$0xff]  }
 0x274   :  { %1732 = vmatprep.mubr.msk.f32.mxu1 %vm2100_vm0, %v2099_v0 }
 0x346   :  { %v514_v57 = vpop.f32.mrb[4].mxu1 }
 0x347   :  { %v1726_v58 = vpop.f32.mrb[5].mxu1  ;;  %v592_v60 = vmul.f32 %v514_v57, %v514_v57 }
 0x348   :  { %v517_v59 = vpop.f32.mrb[6].mxu1  ;;  %v1866_v58 = vld [vmem:[#allocation10 + $0x64] ss:$8 sps:$4 sm:$0xff]  }
 0x349   :  { %v1783_v61 = vpack.c.bf16 %v517_v59, %v514_v57  ;;  %v593_v62 = vmul.f32 %v517_v59, %v517_v59  ;;  %v1727_v63 = vpop.f32.mrb[7].mxu1 }
 0x34b   :  { %v1786_v1 = vpack.c.bf16 %v593_v62, %v592_v60  ;;  %1784 = vmatpush3.bf16.msra.mxu1 %v1783_v61  ;;  %v2102_v60 = vmov 0   ;;  %v1869_v61 = vld [vmem:[#allocation10 + $0x74] ss:$8 sps:$4 sm:$0xff]   ;;  %v1867_v62 = vld [vmem:[#allocation10 + $0x70] ss:$8 sps:$4 sm:$0xff]  }
 0x34c   :  { %1785 = vmatprep.subr.bf16.mxu1 %v2101_v10  ;;  %1094 = vmatprep.mubr.bf16.mxu0 %v2102_v60 }
 0x34e   :  { %1733 = vmatmul.mubr.msk.f32.vlgmr.msra.gmra.mrb[8].mxu1 %vm243_vm2, %v2287_v21 }
 0x34f   :  { %1787 = vmatpush3.bf16.msra.mxu1 %v1786_v1  ;;  %1739 = vmatprep.mubr.msk.f32.mxu1 %vm2100_vm0, %v2099_v0 }
 0x350   :  { %1742 = vmatprep.subr.bf16.mxu1 %v2099_v0 }
 0x352   :  { %1740 = vmatmul.mubr.msk.f32.vlgmr.msra.gmra.mrb[10].mxu1 %vm243_vm2, %v2287_v21 }
 0x353   :  { %1758 = vmatprep.mubr.msk.bf16.mxu1 %vm2100_vm0, %v2099_v0  ;;  %1743 = vmatpush3.bf16.msra.mxu1 %v1838_v2 }
 0x354   :  { %1744 = vmatprep.subr.bf16.mxu1 %v2099_v0 }
 0x357   :  { %1745 = vmatpush3.bf16.msra.mxu1 %v1839_v3 }
 0x358   :  { %1746 = vmatprep.subr.bf16.mxu1 %v2099_v0 }
 0x35b   :  { %1747 = vmatpush3.bf16.msra.mxu1 %v1840_v4 }
 0x35c   :  { %1748 = vmatprep.subr.bf16.mxu1 %v2099_v0 }
 0x35f   :  { %1749 = vmatpush3.bf16.msra.mxu1 %v1841_v5 }
 0x360   :  { %1750 = vmatprep.subr.bf16.mxu1 %v2099_v0 }
 0x363   :  { %1751 = vmatpush3.bf16.msra.mxu1 %v1842_v6 }
 0x364   :  { %1752 = vmatprep.subr.bf16.mxu1 %v2099_v0 }
 0x367   :  { %1753 = vmatpush3.bf16.msra.mxu1 %v1843_v7 }
 0x368   :  { %1754 = vmatprep.subr.bf16.mxu1 %v2099_v0 }
 0x36b   :  { %1755 = vmatpush3.bf16.msra.mxu1 %v1844_v8 }
 0x36c   :  { %1756 = vmatprep.subr.bf16.mxu1 %v2099_v0 }
 0x36f   :  { %1757 = vmatpush3.bf16.msra.mxu1 %v1845_v9 }
 0x370   :  { %1788 = vmatprep.subr.bf16.mxu1 %v2101_v10 }
 0x421   :  { %v587_v11 = vpop.f32.mrb[8].mxu1 }
 0x422   :  { %v591_v12 = vmul.f32 0.125, %v587_v11  ;;  %v1734_v13 = vpop.f32.mrb[9].mxu1  ;;  %v688_v11 = vld [vmem:[#allocation13 + $0x4] ss:$0 sm:$0xff] }
 0x424   :  { %v665_v15 = vmul.f32 %v591_v12, %v591_v12 }
 0x425   :  { %v660_v14 = vpop.f32.mrb[10].mxu1 }
 0x426   :  { %v664_v16 = vmul.f32 0.125, %v660_v14  ;;  %v1741_v17 = vpop.f32.mrb[11].mxu1  ;;  %v689_v14 = vld [vmem:[#allocation13 + $0x5] ss:$0 sm:$0xff] }
 0x428   :  { %v666_v18 = vsub.f32 %v664_v16, %v665_v15 }
 0x42a   :  { %v667_v19 = vmax.f32 %v666_v18, 0.0 }
 0x42c   :  { %v668_v20 = vadd.f32 1e-05, %v667_v19 }
 0x42e   :  { %1888 = vrsqrt.f32 %v668_v20 }
 0x438   :  { %v1889_v23 = vpop.eup %1888 }
 0x439   :  { %v670_v24 = vmul.f32 %v1889_v23, %v414_v22 }
 0x43b   :  { %v671_v26 = vmul.f32 %v670_v24, %v591_v12  ;;  %v676_v27 = vrot.slane %v670_v24, %v2310_v42 }
 0x43d   :  { %v672_v28 = vsub.f32 %v415_v25, %v671_v26  ;;  %v677_v29 = vmul.f32 %v676_v27, %v514_v57  ;;  %v678_v30 = vmul.f32 %v676_v27, %v517_v59  ;;  %v1863_v57 = vld [vmem:[#allocation10 + $0x54] ss:$8 sps:$4 sm:$0xff]   ;;  %v1864_v59 = vld [vmem:[#allocation10 + $0x60] ss:$8 sps:$4 sm:$0xff]  }
 0x43f   :  { %v682_v31 = vrot.slane %v672_v28, %v2310_v42 }
 0x441   :  { %v683_v32 = vadd.f32 %v682_v31, %v677_v29  ;;  %v684_v33 = vadd.f32 %v682_v31, %v678_v30 }
 0x443   :  { %v685_v34 = vmax.f32 %v683_v32, 0.0  ;;  %v686_v35 = vmax.f32 %v684_v33, 0.0 }
 0x445   :  { %v687_v36 = vpack.c.bf16 %v686_v35, %v685_v34 }
 0x447   :  { %1759 = vmatmul.mubr.bf16.vlgmr.msra.gmra.mrb[12].mxu1 %v687_v36 }
 0x448   :  { %1766 = vmatprep.mubr.msk.f32.mxu1 %vm2100_vm0, %v2099_v0 }
 0x51a   :  { %v2339_v37 = vpop.f32.mrb[12].mxu1 }
 0x51b   :  { %v1760_v38 = vpop.f32.mrb[13].mxu1  ;;  %v866_v41 = vmul.f32 %v2339_v37, %v2339_v37 }
 0x51c   :  { %v2341_v39 = vpop.f32.mrb[14].mxu1 }
 0x51d   :  { %v1789_v43 = vpack.c.bf16 %v2341_v39, %v2339_v37  ;;  %v867_v44 = vmul.f32 %v2341_v39, %v2341_v39  ;;  %v1761_v45 = vpop.f32.mrb[15].mxu1 }
 0x51e   :  { %v1874_v45 = vld [vmem:[#allocation11 + $0x50] sm:$0xff]  }
 0x51f   :  { %v1792_v46 = vpack.c.bf16 %v867_v44, %v866_v41  ;;  %1790 = vmatpush3.bf16.msra.mxu1 %v1789_v43  ;;  %v1871_v41 = vld [vmem:[#allocation11] sm:$0xff]   ;;  %v1872_v43 = vld [vmem:[#allocation11 + $0x48] sm:$0xff]  }
 0x520   :  { %1791 = vmatprep.subr.bf16.mxu1 %v2101_v10  ;;  %v1854_v10 = vld [vmem:[#allocation10 + $0x24] ss:$8 sps:$4 sm:$0xff]  }
 0x521   :  { %1066 = vmatprep.subr.bf16.mxu0 %v1854_v10  ;;  %v1873_v44 = vld [vmem:[#allocation11 + $0x8] sm:$0xff]   ;;  %v1882_v10 = vld [vmem:[#allocation11 + $0x70] sm:$0xff]  }
 0x522   :  { %1767 = vmatmul.mubr.msk.f32.vlgmr.msra.gmra.mrb[16].mxu1 %vm243_vm2, %v2287_v21  ;;  %1067 = vmatpush1.bf16.msra.mxu0 %v1852_v51  ;;  %v1883_v51 = vld [vmem:[#allocation11 + $0x30] sm:$0xff]  }
 0x523   :  { %1793 = vmatpush3.bf16.msra.mxu1 %v1792_v46  ;;  %1773 = vmatprep.mubr.msk.f32.mxu1 %vm2100_vm0, %v2099_v0  ;;  %v1875_v46 = vld [vmem:[#allocation11 + $0x10] sm:$0xff]  }
 0x524   :  { %1068 = vmatprep.subr.bf16.mxu0 %v1857_v52  ;;  %v1884_v52 = vld [vmem:[#allocation11 + $0x78] sm:$0xff]  }
 0x526   :  { %1774 = vmatmul.mubr.msk.f32.vlgmr.msra.gmra.mrb[18].mxu1 %vm243_vm2, %v2287_v21  ;;  %1069 = vmatpush1.bf16.msra.mxu0 %v1855_v53  ;;  %v1885_v53 = vld [vmem:[#allocation11 + $0x38] sm:$0xff]  }
 0x527   :  { %1169 = vmatprep.mubr.f32.mxu1 %v2099_v0  ;;  %1070 = vmatprep.subr.bf16.mxu0 %v1860_v54 }
 0x52a   :  { %1071 = vmatpush1.bf16.msra.mxu0 %v1858_v55 }
 0x52b   :  { %1072 = vmatprep.subr.bf16.mxu0 %v1863_v57 }
 0x52e   :  { %1073 = vmatpush1.bf16.msra.mxu0 %v1861_v56 }
 0x52f   :  { %1074 = vmatprep.subr.bf16.mxu0 %v1866_v58 }
 0x532   :  { %1075 = vmatpush1.bf16.msra.mxu0 %v1864_v59 }
 0x533   :  { %1076 = vmatprep.subr.bf16.mxu0 %v1869_v61 }
 0x536   :  { %1077 = vmatpush1.bf16.msra.mxu0 %v1867_v62 }
 0x5f5   :  { %v861_v63 = vpop.f32.mrb[16].mxu1 }
 0x5f6   :  { %v865_v1 = vmul.f32 0.125, %v861_v63  ;;  %v1768_v2 = vpop.f32.mrb[17].mxu1 }
 0x5f8   :  { %v939_v4 = vmul.f32 %v865_v1, %v865_v1 }
 0x5f9   :  { %v934_v3 = vpop.f32.mrb[18].mxu1 }
 0x5fa   :  { %v938_v5 = vmul.f32 0.125, %v934_v3  ;;  %v1775_v6 = vpop.f32.mrb[19].mxu1 }
 0x5fc   :  { %v940_v7 = vsub.f32 %v938_v5, %v939_v4 }
 0x5fe   :  { %v941_v8 = vmax.f32 %v940_v7, 0.0  ;;  %v2103_v7 = vmov 1966171168  }
 0x600   :  { %v942_v9 = vadd.f32 1e-05, %v941_v8  ;;  %v1269_v8 = vunpack.c.l.s4 %v2103_v7 }
 0x602   :  { %1890 = vrsqrt.f32 %v942_v9  ;;  %v1270_v9 = vunpack.c.0.s8 %v1269_v8 }
 0x60c   :  { %v1891_v12 = vpop.eup %1890 }
 0x60d   :  { %v944_v13 = vmul.f32 %v1891_v12, %v688_v11  ;;  %v1273_v12 = vsub.s32 %v1270_v9, %v2307_v40 }
 0x60f   :  { %v945_v15 = vmul.f32 %v944_v13, %v865_v1  ;;  %v950_v16 = vrot.slane %v944_v13, %v2310_v42 }
 0x611   :  { %v946_v17 = vsub.f32 %v689_v14, %v945_v15  ;;  %v951_v18 = vmul.f32 %v950_v16, %v2339_v37  ;;  %v952_v19 = vmul.f32 %v950_v16, %v2341_v39  ;;  %v1870_v39 = vld [vmem:[#allocation11 + $0x40] sm:$0xff]  }
 0x612   :  { %1652 = vmatprep.subr.bf16.mxu0 %v1870_v39  ;;  %v963_v16 = vld [vmem:[#allocation13 + $0x6] ss:$8 sm:$0x3] }
 0x613   :  { %v956_v20 = vrot.slane %v946_v17, %v2310_v42 }
 0x615   :  { %v957_v22 = vadd.f32 %v956_v20, %v951_v18  ;;  %v958_v23 = vadd.f32 %v956_v20, %v952_v19  ;;  %v1291_v18 = vsub.s32 1, %v2307_v40 }
 0x617   :  { %v959_v24 = vmax.f32 %v957_v22, 0.0  ;;  %v960_v25 = vmax.f32 %v958_v23, 0.0 }
 0x619   :  { %v961_v26 = vpack.c.bf16 %v960_v25, %v959_v24 }
 0x61b   :  { %1095 = vmatmul.mubr.bf16.vlgmr.msra.gmra.mrb[4].mxu0 %v961_v26 }
 0x61c   :  { %1653 = vmatpush3.bf16.msra.mxu0 %v1871_v41 }
 0x61d   :  { %1654 = vmatprep.subr.bf16.mxu0 %v1872_v43 }
 0x620   :  { %1655 = vmatpush3.bf16.msra.mxu0 %v1873_v44 }
 0x621   :  { %1656 = vmatprep.subr.bf16.mxu0 %v1874_v45 }
 0x624   :  { %1657 = vmatpush3.bf16.msra.mxu0 %v1875_v46 }
 0x625   :  { %1658 = vmatprep.subr.bf16.mxu0 %v1876_v47 }
 0x628   :  { %1659 = vmatpush3.bf16.msra.mxu0 %v1877_v48  ;;  %v1341_v48 = vld [vmem:[#allocation13 + $0x10] ss:$0 sm:$0xff] }
 0x629   :  { %1660 = vmatprep.subr.bf16.mxu0 %v1878_v49 }
 0x6ee   :  { %v2361_v27 = vpop.f32.mrb[4].mxu0 }
 0x6ef   :  { %v2363_v28 = vpop.f32.mrb[5].mxu0  ;;  %v1178_v30 = vmul.f32 %v2361_v27, %v2361_v27 }
 0x6f0   :  { %v2365_v29 = vpop.f32.mrb[6].mxu0  ;;  %v1179_v34 = vmul.f32 %v2363_v28, %v2363_v28 }
 0x6f1   :  { %v1796_v31 = vpack.c.bf16 %v2365_v29, %v2361_v27  ;;  %v1180_v32 = vmul.f32 %v2365_v29, %v2365_v29  ;;  %v2373_v33 = vpop.f32.mrb[7].mxu0 }
 0x6f2   :  { %v1794_v35 = vpack.c.bf16 %v2373_v33, %v2363_v28  ;;  %v1181_v36 = vmul.f32 %v2373_v33, %v2373_v33 }
 0x6f3   :  { %v1800_v37 = vpack.c.bf16 %v1180_v32, %v1178_v30 }
 0x6f4   :  { %1795 = vmatprep.subr.bf16.mxu1 %v1794_v35  ;;  %v1798_v38 = vpack.c.bf16 %v1181_v36, %v1179_v34  ;;  %v965_v35 = vld [vmem:[#allocation13 + $0x7] ss:$8 sm:$0x3] }
 0x6f5   :  { %1797 = vmatpush1.bf16.msra.mxu1 %v1796_v31 }
 0x6f6   :  { %1799 = vmatprep.subr.bf16.mxu1 %v1798_v38 }
 0x6f8   :  { %1589 = vmatmul.mubr.msk.f32.vlgmr.msra.gmra.mrb[20].mxu1 %vm243_vm2, %v2287_v21 }
 0x6f9   :  { %1801 = vmatpush1.bf16.msra.mxu1 %v1800_v37  ;;  %1246 = vmatprep.mubr.f32.mxu1 %v2099_v0  ;;  %v1879_v0 = vld [vmem:[#allocation11 + $0x20] sm:$0xff]  }
 0x6fa   :  { %1661 = vmatpush3.bf16.msra.mxu0 %v1879_v0 }
 0x6fc   :  { %1590 = vmatmul.mubr.msk.f32.vlgmr.msra.gmra.mrb[22].mxu1 %vm243_vm2, %v2287_v21  ;;  %v1880_v21 = vld [vmem:[#allocation11 + $0x68] sm:$0xff]  }
 0x6fd   :  { %1662 = vmatprep.subr.bf16.mxu0 %v1880_v21 }
 0x6fe   :  { %1663 = vmatpush3.bf16.msra.mxu0 %v1881_v50 }
 0x6ff   :  { %1664 = vmatprep.subr.bf16.mxu0 %v1882_v10 }
 0x702   :  { %1665 = vmatpush3.bf16.msra.mxu0 %v1883_v51 }
 0x703   :  { %1666 = vmatprep.subr.bf16.mxu0 %v1884_v52 }
 0x706   :  { %1667 = vmatpush3.bf16.msra.mxu0 %v1885_v53 }
 0x7cb   :  { %v1171_v54 = vpop.f32.mrb[20].mxu1 }
 0x7cc   :  { %v1176_v55 = vmul.f32 0.125, %v1171_v54  ;;  %v1173_v56 = vpop.f32.mrb[21].mxu1 }
 0x7cd   :  { %v1177_v57 = vmul.f32 0.125, %v1173_v56 }
 0x7ce   :  { %v1255_v59 = vmul.f32 %v1176_v55, %v1176_v55 }
 0x7cf   :  { %v1248_v58 = vpop.f32.mrb[22].mxu1  ;;  %v1256_v62 = vmul.f32 %v1177_v57, %v1177_v57 }
 0x7d0   :  { %v1253_v60 = vmul.f32 0.125, %v1248_v58  ;;  %v1250_v61 = vpop.f32.mrb[23].mxu1 }
 0x7d1   :  { %v1254_v63 = vmul.f32 0.125, %v1250_v61 }
 0x7d2   :  { %v1257_v1 = vsub.f32 %v1253_v60, %v1255_v59 }
 0x7d3   :  { %v1258_v2 = vsub.f32 %v1254_v63, %v1256_v62 }
 0x7d4   :  { %v1259_v3 = vmax.f32 %v1257_v1, 0.0 }
 0x7d5   :  { %v1260_v4 = vmax.f32 %v1258_v2, 0.0 }
 0x7d6   :  { %v1261_v5 = vadd.f32 1e-05, %v1259_v3 }
 0x7d7   :  { %v1262_v6 = vadd.f32 1e-05, %v1260_v4 }
 0x7d8   :  { %1892 = vrsqrt.f32 %v1261_v5 }
 0x7d9   :  { %1894 = vrsqrt.f32 %v1262_v6 }
 0x7e2   :  { %v1893_v11 = vpop.eup %1892 }
 0x7e3   :  { %v1895_v13 = vpop.eup %1894 }
 0x7e4   :  { %v1267_v14 = vcombine.low %v1893_v11, %v1895_v13 }
 0x7e6   :  { %v1274_v15 = vrot.slane %v1267_v14, %v1273_v12 }
 0x7e8   :  { %v1281_v17 = vrot.slane %v1274_v15, %v1273_v12 }
 0x7ea   :  { %v1283_v19 = vmul.f32 %v1281_v17, %v963_v16 }
 0x7ec   :  { %v1288_v20 = vrot.slane %v1283_v19, %v2310_v42  ;;  %v1292_v22 = vrot.slane %v1283_v19, %v1291_v18 }
 0x7ee   :  { %v1295_v23 = vmul.f32 %v1288_v20, %v1176_v55  ;;  %v1296_v24 = vmul.f32 %v1292_v22, %v1177_v57  ;;  %v1317_v25 = vmul.f32 %v1292_v22, %v2363_v28  ;;  %v1319_v26 = vmul.f32 %v1292_v22, %v2373_v33 }
 0x7ef   :  { %v1316_v30 = vmul.f32 %v1288_v20, %v2361_v27  ;;  %v1318_v31 = vmul.f32 %v1288_v20, %v2365_v29 }
 0x7f0   :  { %v1299_v32 = vcombine.low %v1295_v23, %v1296_v24 }
 0x7f2   :  { %v1306_v34 = vrot.slane %v1299_v32, %v1273_v12 }
 0x7f4   :  { %v1313_v36 = vrot.slane %v1306_v34, %v1273_v12 }
 0x7f6   :  { %v1315_v37 = vsub.f32 %v965_v35, %v1313_v36 }
 0x7f8   :  { %v1328_v40 = vrot.slane %v1315_v37, %v1291_v18  ;;  %v1324_v38 = vrot.slane %v1315_v37, %v2310_v42 }
 0x7fa   :  { %v1332_v39 = vadd.f32 %v1328_v40, %v1317_v25  ;;  %v1334_v41 = vadd.f32 %v1328_v40, %v1319_v26  ;;  %v1331_v43 = vadd.f32 %v1324_v38, %v1316_v30  ;;  %v1333_v44 = vadd.f32 %v1324_v38, %v1318_v31 }
 0x7fc   :  { %v1336_v45 = vmax.f32 %v1332_v39, 0.0  ;;  %v1338_v28 = vmax.f32 %v1334_v41, 0.0  ;;  %v1335_v46 = vmax.f32 %v1331_v43, 0.0  ;;  %v1337_v33 = vmax.f32 %v1333_v44, 0.0 }
 0x7fe   :  { %v1340_v47 = vpack.c.bf16 %v1338_v28, %v1336_v45  ;;  %v1339_v27 = vpack.c.bf16 %v1337_v33, %v1335_v46 }
 0x800   :  { %1502 = vmatprep.mubr.bf16.mxu0 %v1340_v47 }
 0x801   :  { %1503 = vmatmul.mubr.bf16.vlgmr.msra.gmra.mrb[8].mxu0 %v1339_v27 }
 0x8d4   :  { %v1668_v29 = vpop.f32.mrb[8].mxu0 }
 0x8d5   :  { %v1669_v49 = vpop.f32.mrb[9].mxu0 }
 0x8d6   :  { %v1670_v0 = vadd.f32 %v1669_v49, %v1668_v29  ;;  %v1671_v21 = vpop.f32.mrb[10].mxu0 }
 0x8d7   :  { %v1672_v50 = vpop.f32.mrb[11].mxu0 }
 0x8d8   :  { %v1505_v10 = vadd.f32 %v1670_v0, %v1341_v48  ;;  %v1673_v42 = vadd.f32 %v1672_v50, %v1671_v21 }
 0x8da   :  { %v1511_v51 = vmul.f32 0.5, %v1505_v10  ;;  %v1508_v52 = vadd.f32 %v1673_v42, %v1341_v48 }
 0x8dc   :  { %1896 = vtanh.f32 %v1511_v51  ;;  %v1512_v53 = vmul.f32 0.5, %v1508_v52 }
 0x8de   :  { %1898 = vtanh.f32 %v1512_v53 }
 0x8e6   :  { %v1897_v54 = vpop.eup %1896 }
 0x8e7   :  { %v1515_v55 = vadd.f32 1.0, %v1897_v54 }
 0x8e8   :  { %v1899_v56 = vpop.eup %1898 }
 0x8e9   :  { %v1516_v57 = vadd.f32 1.0, %v1899_v56  ;;  %v1517_v58 = vmul.f32 0.5, %v1515_v55 }
 0x8eb   :  { %v1518_v59 = vmul.f32 0.5, %v1516_v57  ;;  %1519 = vst [vmem:[#allocation14] sm:$0xff] %v1517_v58 }
 0x8ed   :  { %1520 = vst [vmem:[#allocation14 + $0x8] sm:$0xff] %v1518_v59 }
 0x8ee   :  { %2065 = shalt.err (!%p2062_p4)
}
 0x8ef   :  { %s2066_s18 = scalar_lea.hbm %s2416_s7, 256 }
 0x8f0   :  { %p2067_p5 = scmp.ne.s32.totalorder %s2416_s7, %s2066_s18  ;;  %p2070_p6 = scmp.lt.u32.totalorder %s2066_s18, %s2416_s7 }
 0x8f2   :  { %p2072_p7 = pnand %p2070_p6, %p2067_p5 }
 0x8f4   :  { %2075 = shalt.err (!%p2072_p7)
}
 0x8f5   :  { %1532 = dma.vmem_to_hbm [thread:$0]  %s1527_s0, 256, %s2416_s7, [#allocation4], %s2094_s2, %s2094_s2, %s2095_s13  }
 0x8f6   :  { %2084 = dma.done.wait [#allocation4], 256  }
 0x8f7   :  { %2085 = vsyncadd [#allocation4], 4294967040 }
 0x8f8   :  { %1536 = vsyncpa [#allocation3], 1 }
 0x8f9   :  { %1537 = vsyncpa [#allocation6], 1 }
 0x8fa   :  { %1538 = vsyncpa [#allocation9], 1 }
 0x8fb   :  { %1539 = vsyncpa [#allocation12], 1 }
 0x8fc   :  { %1540 = vsyncpa [#allocation4], 1 }

</bundles_post_ra>
